<compile_context>
chip_gen: v7x
topology: tpu7x:2x2x1
jax: 0.10.0
libtpu: 0.0.40
codegen_flags: <defaults>
</compile_context>

<pallas_src>
import jax
import jax.numpy as jnp
import numpy as np
from jax.experimental import pallas as pl
from jax.experimental.pallas import tpu as pltpu


# (dy, dx) offsets in the same order as the HWIO weight reshape (ky, kx).
_OFFSETS = tuple((dy, dx) for dy in (-1, 0, 1) for dx in (-1, 0, 1))

# Chunks of the batch per pallas grid (2 == v7x TensorCore count; use 1 on
# single-TC v5e/v6e to fold the whole batch into one grid step).
MAX_GRID_STEPS = 2


def _build_halo_masks(H, W):
    """(9, H*W) {0,1} float32: mask[k, y*W+x] == 1 iff (y+dy, x+dx) lies
    inside the image for offset k=(dy,dx).  Pure numpy at trace time."""
    yy, xx = np.meshgrid(np.arange(H), np.arange(W), indexing="ij")
    yy = yy.reshape(-1)
    xx = xx.reshape(-1)
    rows = []
    for dy, dx in _OFFSETS:
        valid = ((yy + dy >= 0) & (yy + dy < H) &
                 (xx + dx >= 0) & (xx + dx < W))
        rows.append(valid.astype(np.float32))
    return jnp.asarray(np.stack(rows, axis=0))


# ----------------------------------------------------------------------------
# Fused kernel: conv1(3x3) -> conv2(3x3) -> conv3(1x1) -> sigmoid
# ----------------------------------------------------------------------------
def _make_kernel(H, W, bpg, mxu_dtype):
    HW = H * W

    def kernel(x_ref, masks_ref, w1_ref, b1_ref, w2_ref, b2_ref,
               w3_ref, b3_ref, o_ref):
        """Processes `bpg` images; all intermediates stay in vregs/VMEM.

        x_ref:     (bpg, Cin, HW)   NCHW with H*W on the lane axis
        masks_ref: (9, HW)          {0,1} halo-validity masks
        w1_ref:    (Cout, 9*Cin)    BN scale folded in
        w2_ref:    (Cout, 9*Cout)   BN scale folded in
        w3_ref:    (Cout, Cout)     BN scale folded in
        b*_ref:    (Cout, 1)        folded BN bias
        o_ref:     (bpg, Cout, HW)  lane-dense output slab
        """

        def conv3x3(v, w_ref, b_ref):
            # im2col via lane rolls + border-mask multiplies; patches are
            # stacked along the sublane axis -> one (Cout,9C)@(9C,HW) matmul.
            parts = []
            for k, (dy, dx) in enumerate(_OFFSETS):
                s = dy * W + dx                      # flat-HW shift
                if s == 0:
                    parts.append(v)
                else:
                    shifted = pltpu.roll(v, shift=(-s) % HW, axis=1)
                    parts.append(shifted * masks_ref[k:k + 1, :])
            p = jnp.concatenate(parts, axis=0)       # (9*C, HW)
            y = jnp.dot(w_ref[...].astype(mxu_dtype), p.astype(mxu_dtype),
                        preferred_element_type=jnp.float32)
            return jnp.clip(y + b_ref[...], 0.0, 6.0)        # BN bias + ReLU6

        for i in range(bpg):                         # static unroll, bpg small
            v = x_ref[i]                             # (Cin, HW) f32
            v = conv3x3(v, w1_ref, b1_ref)           # (Cout, HW)
            v = conv3x3(v, w2_ref, b2_ref)           # (Cout, HW)
            # conv3: 1x1 + BN bias + ReLU6 (matches spec) + sigmoid
            v = jnp.dot(w3_ref[...].astype(mxu_dtype), v.astype(mxu_dtype),
                        preferred_element_type=jnp.float32)
            v = jnp.clip(v + b3_ref[...], 0.0, 6.0)
            o_ref[i] = jax.nn.sigmoid(v)

    return kernel


# ----------------------------------------------------------------------------
# pallas_call wrapper
# ----------------------------------------------------------------------------
def _attention_head_pallas(x, masks, w1f, b1, w2f, b2, w3f, b3, H, W,
                           max_grid_steps=MAX_GRID_STEPS,
                           mxu_dtype=jnp.float32):
    B, Cin, HW = x.shape
    Cout = w1f.shape[0]

    # Number of independent batch chunks (<= max_grid_steps, divides B).
    steps = max(g for g in range(1, max_grid_steps + 1) if B % g == 0)
    bpg = B // steps

    kernel = _make_kernel(H, W, bpg, mxu_dtype)

    out = pl.pallas_call(
        kernel,
        out_shape=jax.ShapeDtypeStruct((B, Cout, HW), jnp.float32),
        grid_spec=pltpu.PrefetchScalarGridSpec(
            num_scalar_prefetch=0,
            grid=(steps,),
            in_specs=[
                pl.BlockSpec((bpg, Cin, HW), lambda g: (g, 0, 0)),
                # Constant operands: index_map never changes across steps, so
                # the pipeline does not re-fetch them.  (Could also be
                # single-buffered via pipeline_mode=pl.Buffered(1); minor.)
                pl.BlockSpec(masks.shape, lambda g: (0, 0)),
                pl.BlockSpec(w1f.shape, lambda g: (0, 0)),
                pl.BlockSpec(b1.shape, lambda g: (0, 0)),
                pl.BlockSpec(w2f.shape, lambda g: (0, 0)),
                pl.BlockSpec(b2.shape, lambda g: (0, 0)),
                pl.BlockSpec(w3f.shape, lambda g: (0, 0)),
                pl.BlockSpec(b3.shape, lambda g: (0, 0)),
            ],
            out_specs=pl.BlockSpec((bpg, Cout, HW), lambda g: (g, 0, 0)),
        ),
        compiler_params=pltpu.CompilerParams(
            # Batch chunks are independent -> shard across v7x TensorCores.
            dimension_semantics=("parallel",),
        ),
    )(x, masks, w1f, b1, w2f, b2, w3f, b3)
    return out


@jax.jit
def attention_head_forward(x_nchw, params):
    B, Cin, H, W = x_nchw.shape
    Cout = params["w1"].shape[-1]

    # NCHW stays NCHW: flattening H*W onto the lane axis is a free reshape
    # (no transposes anywhere on the main data path).
    x = x_nchw.reshape(B, Cin, H * W).astype(jnp.float32)

    # Fold BN scale into the conv weights (convs are bias-free); resulting
    # layout (Cout, 9*Cin) with column order (dy, dx, cin), matching the
    # in-kernel patch stacking.  Keep only the folded BN bias in-kernel.
    w1f = (params["w1"] * params["s1"]).reshape(9 * Cin, Cout).T
    w2f = (params["w2"] * params["s2"]).reshape(9 * Cout, Cout).T
    w3f = (params["w3"] * params["s3"]).T
    b1 = params["bb1"].reshape(Cout, 1)
    b2 = params["bb2"].reshape(Cout, 1)
    b3 = params["bb3"].reshape(Cout, 1)

    masks = _build_halo_masks(H, W)

    y = _attention_head_pallas(x, masks, w1f, b1, w2f, b2, w3f, b3, H, W)
    return y.reshape(B, Cout, H, W)       # free reshape back to NCHW


# ----------------------------------------------------------------------------
# Parameter construction (deterministic, BN running-stats semantics)
# ----------------------------------------------------------------------------
def _fold_bn(gamma, beta, mean, var, eps=1e-5):
    scale = gamma / jnp.sqrt(var + eps)
    bias = beta - mean * scale
    return scale, bias


def make_params(key, in_chs, out_chs):
    ks = jax.random.split(key, 12)
    params = {}
    # conv1: 3x3, in_chs -> out_chs (no conv bias; BN follows).  HWIO layout.
    params["w1"] = 0.1 * jax.random.normal(ks[0], (3, 3, in_chs, out_chs), jnp.float32)
    g1 = 1.0 + 0.05 * jax.random.normal(ks[1], (out_chs,), jnp.float32)
    b1 = 0.05 * jax.random.normal(ks[2], (out_chs,), jnp.float32)
    m1 = 0.05 * jax.random.normal(ks[3], (out_chs,), jnp.float32)
    v1 = jnp.abs(jax.random.normal(ks[4], (out_chs,), jnp.float32)) + 0.5
    params["s1"], params["bb1"] = _fold_bn(g1, b1, m1, v1)
    # conv2: 3x3, out_chs -> out_chs
    params["w2"] = 0.1 * jax.random.normal(ks[5], (3, 3, out_chs, out_chs), jnp.float32)
    g2 = 1.0 + 0.05 * jax.random.normal(ks[6], (out_chs,), jnp.float32)
    b2 = 0.05 * jax.random.normal(ks[7], (out_chs,), jnp.float32)
    m2 = 0.05 * jax.random.normal(ks[8], (out_chs,), jnp.float32)
    v2 = jnp.abs(jax.random.normal(ks[9], (out_chs,), jnp.float32)) + 0.5
    params["s2"], params["bb2"] = _fold_bn(g2, b2, m2, v2)
    # conv3: 1x1, out_chs -> out_chs ; weight stored (Cin, Cout)
    params["w3"] = 0.1 * jax.random.normal(ks[10], (out_chs, out_chs), jnp.float32)
    g3 = jnp.ones((out_chs,), jnp.float32)
    b3 = 0.05 * jax.random.normal(ks[11], (out_chs,), jnp.float32)
    m3 = jnp.zeros((out_chs,), jnp.float32)
    v3 = jnp.ones((out_chs,), jnp.float32)
    params["s3"], params["bb3"] = _fold_bn(g3, b3, m3, v3)
    return params


# ----------------------------------------------------------------------------
# Pure-JAX reference (correctness check)
# ----------------------------------------------------------------------------
def _ref_forward(x_nchw, params):
    x = jnp.transpose(x_nchw, (0, 2, 3, 1))   # reference only: NHWC conv
    dn = jax.lax.conv_dimension_numbers(x.shape, params["w1"].shape,
                                        ("NHWC", "HWIO", "NHWC"))

    def conv_bn_relu6(x, w, s, b, pad):
        y = jax.lax.conv_general_dilated(x, w, (1, 1), pad, dimension_numbers=dn)
        y = y * s + b
        return jnp.clip(y, 0.0, 6.0)

    x = conv_bn_relu6(x, params["w1"], params["s1"], params["bb1"], "SAME")
    x = conv_bn_relu6(x, params["w2"], params["s2"], params["bb2"], "SAME")
    w3 = params["w3"][None, None]  # (1,1,Cin,Cout)
    x = conv_bn_relu6(x, w3, params["s3"], params["bb3"], "VALID")
    x = jax.nn.sigmoid(x)
    return jnp.transpose(x, (0, 3, 1, 2))


if __name__ == "__main__":
    key = jax.random.PRNGKey(0)
    kx, kp = jax.random.split(key)

    B, in_chs, H, W = 2, 4, 16, 16
    out_chs = 8

    x = jax.random.normal(kx, (B, in_chs, H, W), jnp.float32)
    params = make_params(kp, in_chs, out_chs)

    out = jax.block_until_ready(attention_head_forward(x, params))
    ref = jax.block_until_ready(_ref_forward(x, params))

    assert out.shape == (B, out_chs, H, W)
    assert jnp.allclose(out, ref, atol=1e-5, rtol=1e-5), "mismatch vs reference"

    print("KERNEL_OK")
</pallas_src>

<mosaic_0001>
module attributes {stable_mosaic.version = 11 : i64} {
  func.func @kernel(%arg0: i32, %arg1: memref<1x4x256xf32, #tpu.memory_space<vmem>>, %arg2: memref<9x256xf32, #tpu.memory_space<vmem>>, %arg3: memref<8x36xf32, #tpu.memory_space<vmem>>, %arg4: memref<8x1xf32, #tpu.memory_space<vmem>>, %arg5: memref<8x72xf32, #tpu.memory_space<vmem>>, %arg6: memref<8x1xf32, #tpu.memory_space<vmem>>, %arg7: memref<8x8xf32, #tpu.memory_space<vmem>>, %arg8: memref<8x1xf32, #tpu.memory_space<vmem>>, %arg9: memref<1x8x256xf32, #tpu.memory_space<vmem>>) attributes {dimension_semantics = [#tpu.dimension_semantics<parallel>], iteration_bounds = array<i64: 2>, scalar_prefetch = 0 : i64, scratch_operands = 0 : i64, tpu.core_type = #tpu.core_type<tc>, window_params = [{transform_indices = @transform_0, window_bounds = array<i64: 1, 4, 256>}, {pipeline_mode = #tpu.pipeline_mode<synchronous>, transform_indices = @transform_1, window_bounds = array<i64: 9, 256>}, {pipeline_mode = #tpu.pipeline_mode<synchronous>, transform_indices = @transform_2, window_bounds = array<i64: 8, 36>}, {pipeline_mode = #tpu.pipeline_mode<synchronous>, transform_indices = @transform_3, window_bounds = array<i64: 8, 1>}, {pipeline_mode = #tpu.pipeline_mode<synchronous>, transform_indices = @transform_4, window_bounds = array<i64: 8, 72>}, {pipeline_mode = #tpu.pipeline_mode<synchronous>, transform_indices = @transform_5, window_bounds = array<i64: 8, 1>}, {pipeline_mode = #tpu.pipeline_mode<synchronous>, transform_indices = @transform_6, window_bounds = array<i64: 8, 8>}, {pipeline_mode = #tpu.pipeline_mode<synchronous>, transform_indices = @transform_7, window_bounds = array<i64: 8, 1>}, {transform_indices = @transform_8, window_bounds = array<i64: 1, 8, 256>}]} {
    %c0 = arith.constant 0 : index
    %c0_0 = arith.constant 0 : index
    %c0_1 = arith.constant 0 : index
    %0 = vector.load %arg1[%c0, %c0_0, %c0_1] : memref<1x4x256xf32, #tpu.memory_space<vmem>>, vector<1x4x256xf32>
    %1 = vector.shape_cast %0 : vector<1x4x256xf32> to vector<4x256xf32>
    %c17_i32 = arith.constant 17 : i32
    %2 = tpu.dynamic_rotate %1 by %c17_i32 dim 1 : vector<4x256xf32>, i32 -> vector<4x256xf32>
    %c0_2 = arith.constant 0 : index
    %c0_3 = arith.constant 0 : index
    %3 = vector.load %arg2[%c0_2, %c0_3] : memref<9x256xf32, #tpu.memory_space<vmem>>, vector<1x256xf32>
    %4 = vector.broadcast %3 : vector<1x256xf32> to vector<4x256xf32>
    %5 = arith.mulf %2, %4 : vector<4x256xf32>
    %c16_i32 = arith.constant 16 : i32
    %6 = tpu.dynamic_rotate %1 by %c16_i32 dim 1 : vector<4x256xf32>, i32 -> vector<4x256xf32>
    %c1 = arith.constant 1 : index
    %c0_4 = arith.constant 0 : index
    %7 = vector.load %arg2[%c1, %c0_4] : memref<9x256xf32, #tpu.memory_space<vmem>>, vector<1x256xf32>
    %8 = vector.broadcast %7 : vector<1x256xf32> to vector<4x256xf32>
    %9 = arith.mulf %6, %8 : vector<4x256xf32>
    %c15_i32 = arith.constant 15 : i32
    %10 = tpu.dynamic_rotate %1 by %c15_i32 dim 1 : vector<4x256xf32>, i32 -> vector<4x256xf32>
    %c2 = arith.constant 2 : index
    %c0_5 = arith.constant 0 : index
    %11 = vector.load %arg2[%c2, %c0_5] : memref<9x256xf32, #tpu.memory_space<vmem>>, vector<1x256xf32>
    %12 = vector.broadcast %11 : vector<1x256xf32> to vector<4x256xf32>
    %13 = arith.mulf %10, %12 : vector<4x256xf32>
    %c1_i32 = arith.constant 1 : i32
    %14 = tpu.dynamic_rotate %1 by %c1_i32 dim 1 : vector<4x256xf32>, i32 -> vector<4x256xf32>
    %c3 = arith.constant 3 : index
    %c0_6 = arith.constant 0 : index
    %15 = vector.load %arg2[%c3, %c0_6] : memref<9x256xf32, #tpu.memory_space<vmem>>, vector<1x256xf32>
    %16 = vector.broadcast %15 : vector<1x256xf32> to vector<4x256xf32>
    %17 = arith.mulf %14, %16 : vector<4x256xf32>
    %c255_i32 = arith.constant 255 : i32
    %18 = tpu.dynamic_rotate %1 by %c255_i32 dim 1 : vector<4x256xf32>, i32 -> vector<4x256xf32>
    %c5 = arith.constant 5 : index
    %c0_7 = arith.constant 0 : index
    %19 = vector.load %arg2[%c5, %c0_7] : memref<9x256xf32, #tpu.memory_space<vmem>>, vector<1x256xf32>
    %20 = vector.broadcast %19 : vector<1x256xf32> to vector<4x256xf32>
    %21 = arith.mulf %18, %20 : vector<4x256xf32>
    %c241_i32 = arith.constant 241 : i32
    %22 = tpu.dynamic_rotate %1 by %c241_i32 dim 1 : vector<4x256xf32>, i32 -> vector<4x256xf32>
    %c6 = arith.constant 6 : index
    %c0_8 = arith.constant 0 : index
    %23 = vector.load %arg2[%c6, %c0_8] : memref<9x256xf32, #tpu.memory_space<vmem>>, vector<1x256xf32>
    %24 = vector.broadcast %23 : vector<1x256xf32> to vector<4x256xf32>
    %25 = arith.mulf %22, %24 : vector<4x256xf32>
    %c240_i32 = arith.constant 240 : i32
    %26 = tpu.dynamic_rotate %1 by %c240_i32 dim 1 : vector<4x256xf32>, i32 -> vector<4x256xf32>
    %c7 = arith.constant 7 : index
    %c0_9 = arith.constant 0 : index
    %27 = vector.load %arg2[%c7, %c0_9] : memref<9x256xf32, #tpu.memory_space<vmem>>, vector<1x256xf32>
    %28 = vector.broadcast %27 : vector<1x256xf32> to vector<4x256xf32>
    %29 = arith.mulf %26, %28 : vector<4x256xf32>
    %c239_i32 = arith.constant 239 : i32
    %30 = tpu.dynamic_rotate %1 by %c239_i32 dim 1 : vector<4x256xf32>, i32 -> vector<4x256xf32>
    %c8 = arith.constant 8 : index
    %c0_10 = arith.constant 0 : index
    %31 = vector.load %arg2[%c8, %c0_10] : memref<9x256xf32, #tpu.memory_space<vmem>>, vector<1x256xf32>
    %32 = vector.broadcast %31 : vector<1x256xf32> to vector<4x256xf32>
    %33 = arith.mulf %30, %32 : vector<4x256xf32>
    %34 = tpu.concatenate %5, %9, %13, %17, %1, %21, %25, %29, %33 in 0 : vector<4x256xf32>, vector<4x256xf32>, vector<4x256xf32>, vector<4x256xf32>, vector<4x256xf32>, vector<4x256xf32>, vector<4x256xf32>, vector<4x256xf32>, vector<4x256xf32> -> vector<36x256xf32>
    %c0_11 = arith.constant 0 : index
    %c0_12 = arith.constant 0 : index
    %35 = vector.load %arg3[%c0_11, %c0_12] : memref<8x36xf32, #tpu.memory_space<vmem>>, vector<8x36xf32>
    %cst = arith.constant dense<0.000000e+00> : vector<8x256xf32>
    %36 = tpu.matmul %35, %34, %cst {dimension_numbers = #tpu.dot_dimension_numbers<[1], [0], [0], [1], [0, 0, 1, 1], [], []>} : vector<8x36xf32>, vector<36x256xf32>, vector<8x256xf32> -> vector<8x256xf32>
    %c0_13 = arith.constant 0 : index
    %c0_14 = arith.constant 0 : index
    %37 = vector.load %arg4[%c0_13, %c0_14] : memref<8x1xf32, #tpu.memory_space<vmem>>, vector<8x1xf32>
    %38 = vector.broadcast %37 : vector<8x1xf32> to vector<8x256xf32>
    %39 = arith.addf %36, %38 : vector<8x256xf32>
    %cst_15 = arith.constant 0.000000e+00 : f32
    %cst_16 = arith.constant 6.000000e+00 : f32
    %40 = vector.broadcast %cst_15 : f32 to vector<8x256xf32>
    %41 = arith.maximumf %40, %39 : vector<8x256xf32>
    %42 = vector.broadcast %cst_16 : f32 to vector<8x256xf32>
    %43 = arith.minimumf %42, %41 : vector<8x256xf32>
    %c17_i32_17 = arith.constant 17 : i32
    %44 = tpu.dynamic_rotate %43 by %c17_i32_17 dim 1 : vector<8x256xf32>, i32 -> vector<8x256xf32>
    %c0_18 = arith.constant 0 : index
    %c0_19 = arith.constant 0 : index
    %45 = vector.load %arg2[%c0_18, %c0_19] : memref<9x256xf32, #tpu.memory_space<vmem>>, vector<1x256xf32>
    %46 = vector.broadcast %45 : vector<1x256xf32> to vector<8x256xf32>
    %47 = arith.mulf %44, %46 : vector<8x256xf32>
    %c16_i32_20 = arith.constant 16 : i32
    %48 = tpu.dynamic_rotate %43 by %c16_i32_20 dim 1 : vector<8x256xf32>, i32 -> vector<8x256xf32>
    %c1_21 = arith.constant 1 : index
    %c0_22 = arith.constant 0 : index
    %49 = vector.load %arg2[%c1_21, %c0_22] : memref<9x256xf32, #tpu.memory_space<vmem>>, vector<1x256xf32>
    %50 = vector.broadcast %49 : vector<1x256xf32> to vector<8x256xf32>
    %51 = arith.mulf %48, %50 : vector<8x256xf32>
    %c15_i32_23 = arith.constant 15 : i32
    %52 = tpu.dynamic_rotate %43 by %c15_i32_23 dim 1 : vector<8x256xf32>, i32 -> vector<8x256xf32>
    %c2_24 = arith.constant 2 : index
    %c0_25 = arith.constant 0 : index
    %53 = vector.load %arg2[%c2_24, %c0_25] : memref<9x256xf32, #tpu.memory_space<vmem>>, vector<1x256xf32>
    %54 = vector.broadcast %53 : vector<1x256xf32> to vector<8x256xf32>
    %55 = arith.mulf %52, %54 : vector<8x256xf32>
    %c1_i32_26 = arith.constant 1 : i32
    %56 = tpu.dynamic_rotate %43 by %c1_i32_26 dim 1 : vector<8x256xf32>, i32 -> vector<8x256xf32>
    %c3_27 = arith.constant 3 : index
    %c0_28 = arith.constant 0 : index
    %57 = vector.load %arg2[%c3_27, %c0_28] : memref<9x256xf32, #tpu.memory_space<vmem>>, vector<1x256xf32>
    %58 = vector.broadcast %57 : vector<1x256xf32> to vector<8x256xf32>
    %59 = arith.mulf %56, %58 : vector<8x256xf32>
    %c255_i32_29 = arith.constant 255 : i32
    %60 = tpu.dynamic_rotate %43 by %c255_i32_29 dim 1 : vector<8x256xf32>, i32 -> vector<8x256xf32>
    %c5_30 = arith.constant 5 : index
    %c0_31 = arith.constant 0 : index
    %61 = vector.load %arg2[%c5_30, %c0_31] : memref<9x256xf32, #tpu.memory_space<vmem>>, vector<1x256xf32>
    %62 = vector.broadcast %61 : vector<1x256xf32> to vector<8x256xf32>
    %63 = arith.mulf %60, %62 : vector<8x256xf32>
    %c241_i32_32 = arith.constant 241 : i32
    %64 = tpu.dynamic_rotate %43 by %c241_i32_32 dim 1 : vector<8x256xf32>, i32 -> vector<8x256xf32>
    %c6_33 = arith.constant 6 : index
    %c0_34 = arith.constant 0 : index
    %65 = vector.load %arg2[%c6_33, %c0_34] : memref<9x256xf32, #tpu.memory_space<vmem>>, vector<1x256xf32>
    %66 = vector.broadcast %65 : vector<1x256xf32> to vector<8x256xf32>
    %67 = arith.mulf %64, %66 : vector<8x256xf32>
    %c240_i32_35 = arith.constant 240 : i32
    %68 = tpu.dynamic_rotate %43 by %c240_i32_35 dim 1 : vector<8x256xf32>, i32 -> vector<8x256xf32>
    %c7_36 = arith.constant 7 : index
    %c0_37 = arith.constant 0 : index
    %69 = vector.load %arg2[%c7_36, %c0_37] : memref<9x256xf32, #tpu.memory_space<vmem>>, vector<1x256xf32>
    %70 = vector.broadcast %69 : vector<1x256xf32> to vector<8x256xf32>
    %71 = arith.mulf %68, %70 : vector<8x256xf32>
    %c239_i32_38 = arith.constant 239 : i32
    %72 = tpu.dynamic_rotate %43 by %c239_i32_38 dim 1 : vector<8x256xf32>, i32 -> vector<8x256xf32>
    %c8_39 = arith.constant 8 : index
    %c0_40 = arith.constant 0 : index
    %73 = vector.load %arg2[%c8_39, %c0_40] : memref<9x256xf32, #tpu.memory_space<vmem>>, vector<1x256xf32>
    %74 = vector.broadcast %73 : vector<1x256xf32> to vector<8x256xf32>
    %75 = arith.mulf %72, %74 : vector<8x256xf32>
    %76 = tpu.concatenate %47, %51, %55, %59, %43, %63, %67, %71, %75 in 0 : vector<8x256xf32>, vector<8x256xf32>, vector<8x256xf32>, vector<8x256xf32>, vector<8x256xf32>, vector<8x256xf32>, vector<8x256xf32>, vector<8x256xf32>, vector<8x256xf32> -> vector<72x256xf32>
    %c0_41 = arith.constant 0 : index
    %c0_42 = arith.constant 0 : index
    %77 = vector.load %arg5[%c0_41, %c0_42] : memref<8x72xf32, #tpu.memory_space<vmem>>, vector<8x72xf32>
    %cst_43 = arith.constant dense<0.000000e+00> : vector<8x256xf32>
    %78 = tpu.matmul %77, %76, %cst_43 {dimension_numbers = #tpu.dot_dimension_numbers<[1], [0], [0], [1], [0, 0, 1, 1], [], []>} : vector<8x72xf32>, vector<72x256xf32>, vector<8x256xf32> -> vector<8x256xf32>
    %c0_44 = arith.constant 0 : index
    %c0_45 = arith.constant 0 : index
    %79 = vector.load %arg6[%c0_44, %c0_45] : memref<8x1xf32, #tpu.memory_space<vmem>>, vector<8x1xf32>
    %80 = vector.broadcast %79 : vector<8x1xf32> to vector<8x256xf32>
    %81 = arith.addf %78, %80 : vector<8x256xf32>
    %cst_46 = arith.constant 0.000000e+00 : f32
    %cst_47 = arith.constant 6.000000e+00 : f32
    %82 = vector.broadcast %cst_46 : f32 to vector<8x256xf32>
    %83 = arith.maximumf %82, %81 : vector<8x256xf32>
    %84 = vector.broadcast %cst_47 : f32 to vector<8x256xf32>
    %85 = arith.minimumf %84, %83 : vector<8x256xf32>
    %c0_48 = arith.constant 0 : index
    %c0_49 = arith.constant 0 : index
    %86 = vector.load %arg7[%c0_48, %c0_49] : memref<8x8xf32, #tpu.memory_space<vmem>>, vector<8x8xf32>
    %cst_50 = arith.constant dense<0.000000e+00> : vector<8x256xf32>
    %87 = tpu.matmul %86, %85, %cst_50 {dimension_numbers = #tpu.dot_dimension_numbers<[1], [0], [0], [1], [0, 0, 1, 1], [], []>} : vector<8x8xf32>, vector<8x256xf32>, vector<8x256xf32> -> vector<8x256xf32>
    %c0_51 = arith.constant 0 : index
    %c0_52 = arith.constant 0 : index
    %88 = vector.load %arg8[%c0_51, %c0_52] : memref<8x1xf32, #tpu.memory_space<vmem>>, vector<8x1xf32>
    %89 = vector.broadcast %88 : vector<8x1xf32> to vector<8x256xf32>
    %90 = arith.addf %87, %89 : vector<8x256xf32>
    %cst_53 = arith.constant 0.000000e+00 : f32
    %cst_54 = arith.constant 6.000000e+00 : f32
    %91 = vector.broadcast %cst_53 : f32 to vector<8x256xf32>
    %92 = arith.maximumf %91, %90 : vector<8x256xf32>
    %93 = vector.broadcast %cst_54 : f32 to vector<8x256xf32>
    %94 = arith.minimumf %93, %92 : vector<8x256xf32>
    %95 = arith.negf %94 : vector<8x256xf32>
    %96 = math.exp %95 : vector<8x256xf32>
    %cst_55 = arith.constant 1.000000e+00 : f32
    %97 = vector.broadcast %cst_55 : f32 to vector<8x256xf32>
    %98 = arith.addf %97, %96 : vector<8x256xf32>
    %99 = arith.divf %97, %98 : vector<8x256xf32>
    %c0_56 = arith.constant 0 : index
    %c0_57 = arith.constant 0 : index
    %c0_58 = arith.constant 0 : index
    %100 = vector.load %arg9[%c0_56, %c0_57, %c0_58] : memref<1x8x256xf32, #tpu.memory_space<vmem>>, vector<1x8x256xf32>
    %101 = vector.shape_cast %100 : vector<1x8x256xf32> to vector<8x256xf32>
    %102 = vector.shape_cast %99 : vector<8x256xf32> to vector<1x8x256xf32>
    tpu.vector_store %arg9[%c0_56, %c0_57, %c0_58], %102 {strides = array<i32>} : memref<1x8x256xf32, #tpu.memory_space<vmem>>, vector<1x8x256xf32>,
    return
  }
  func.func @transform_0(%arg0: i32) -> (i32, i32, i32) {
    %c0_i32 = arith.constant 0 : i32
    %c0_i32_0 = arith.constant 0 : i32
    %c0_i32_1 = arith.constant 0 : i32
    return %arg0, %c0_i32, %c0_i32_0 : i32, i32, i32
  }
  func.func @transform_1(%arg0: i32) -> (i32, i32) {
    %c0_i32 = arith.constant 0 : i32
    %c0_i32_0 = arith.constant 0 : i32
    %c0_i32_1 = arith.constant 0 : i32
    return %c0_i32, %c0_i32_0 : i32, i32
  }
  func.func @transform_2(%arg0: i32) -> (i32, i32) {
    %c0_i32 = arith.constant 0 : i32
    %c0_i32_0 = arith.constant 0 : i32
    %c0_i32_1 = arith.constant 0 : i32
    return %c0_i32, %c0_i32_0 : i32, i32
  }
  func.func @transform_3(%arg0: i32) -> (i32, i32) {
    %c0_i32 = arith.constant 0 : i32
    %c0_i32_0 = arith.constant 0 : i32
    %c0_i32_1 = arith.constant 0 : i32
    return %c0_i32, %c0_i32_0 : i32, i32
  }
  func.func @transform_4(%arg0: i32) -> (i32, i32) {
    %c0_i32 = arith.constant 0 : i32
    %c0_i32_0 = arith.constant 0 : i32
    %c0_i32_1 = arith.constant 0 : i32
    return %c0_i32, %c0_i32_0 : i32, i32
  }
  func.func @transform_5(%arg0: i32) -> (i32, i32) {
    %c0_i32 = arith.constant 0 : i32
    %c0_i32_0 = arith.constant 0 : i32
    %c0_i32_1 = arith.constant 0 : i32
    return %c0_i32, %c0_i32_0 : i32, i32
  }
  func.func @transform_6(%arg0: i32) -> (i32, i32) {
    %c0_i32 = arith.constant 0 : i32
    %c0_i32_0 = arith.constant 0 : i32
    %c0_i32_1 = arith.constant 0 : i32
    return %c0_i32, %c0_i32_0 : i32, i32
  }
  func.func @transform_7(%arg0: i32) -> (i32, i32) {
    %c0_i32 = arith.constant 0 : i32
    %c0_i32_0 = arith.constant 0 : i32
    %c0_i32_1 = arith.constant 0 : i32
    return %c0_i32, %c0_i32_0 : i32, i32
  }
  func.func @transform_8(%arg0: i32) -> (i32, i32, i32) {
    %c0_i32 = arith.constant 0 : i32
    %c0_i32_0 = arith.constant 0 : i32
    %c0_i32_1 = arith.constant 0 : i32
    return %arg0, %c0_i32, %c0_i32_0 : i32, i32, i32
  }
}

</mosaic_0001>

<bundles_post_ra>
// kernel: attention_head_forward.1
= control target key start
LH: loop header
LB: loop body
LE: loop exit
PB: predicated region body
PF: predicated region fallthrough
CT: control target
= control target key end

     0   :  { %s1060_s27 = smov 0   ;;  %s1361_s0 = inlined_call_operand.vmem [shape: f32[2,4,256], index: 0, kind: input, shape index: {}]   ;;  %s1362_s1 = inlined_call_operand.vmem [shape: f32[9,256], index: 1, kind: input, shape index: {}]   ;;  %s1363_s2 = inlined_call_operand.vmem [shape: f32[8,36], index: 2, kind: input, shape index: {}]   ;;  %s1364_s3 = inlined_call_operand.vmem [shape: f32[8,1], index: 3, kind: input, shape index: {}]   ;;  %s1365_s4 = inlined_call_operand.vmem [shape: f32[8,72], index: 4, kind: input, shape index: {}]   ;;  %s1366_s5 = inlined_call_operand.vmem [shape: f32[8,1], index: 5, kind: input, shape index: {}]   ;;  %s1367_s6 = inlined_call_operand.vmem [shape: f32[8,8], index: 6, kind: input, shape index: {}]   ;;  %s1368_s7 = inlined_call_operand.vmem [shape: f32[8,1], index: 7, kind: input, shape index: {}]   ;;  %s1369_s8 = inlined_call_operand.vmem [shape: f32[2,8,256], index: 8, kind: output, shape index: {}]  }
   0x1 LB: > { %s917_s28 = sadd.s32 4294967295, %s1003_s27   ;;  %p921_p0 = scmp.ge.s32.totalorder %s1003_s27, 1  ;;  %s1003_s27 = sphi %s1060_s27, %s18_s27  }
   0x2   : > { %p262_p1 = scmp.lt.s32.totalorder %s1003_s27, 3 }
   0x4   : > { %p263_p2 = pnand %p921_p0, %p262_p1 }
   0x5   : > { %p296_p3 = scmp.lt.s32.totalorder (!%p263_p2), %s917_s28, 1  ;;  %s1005_s11 = smov (!%p263_p2), 1   ;;  %v1011_v2 = vmov (!%p263_p2), 0.0   ;;  %v1013_v3 = vmov (!%p263_p2), 0   ;;  %v521_v4 = vld [vmem:[%s1364_s3] sm:$0xff] (!%p263_p2)  ;;  %v314_v5 = vlaneseq (!%p263_p2)  ;;  %vm511_vm4 = vcmask (!%p263_p2), 1043456  }
   0x6   : > { %266 = sbr.rel (%p263_p2) target bundleno = 1007 (0x3ef), region = 52  ;;  %s1006_s12 = smov (!%p263_p2), 16   ;;  %601 = vmatprep.mubr.f32.mxu0 (!%p263_p2), %v1011_v2  ;;  %751 = vmatprep.mubr.f32.mxu1 (!%p263_p2), %v1011_v2  ;;  %v928_v12 = vld [vmem:[%s1362_s1 + $0x3] ss:$8 sm:$0x3] (!%p263_p2)  ;;  %vm527_vm9 = vcmask (!%p263_p2), 293888  }
   0x7   : > { %s1007_s13 = smov (!%p263_p2), 17   ;;  %s1008_s14 = smov (!%p263_p2), 15   ;;  %986 = vset.pattern.permute.xlu0 (!%p263_p2), %v1013_v3  ;;  %987 = vset.pattern.permute.xlu1 (!%p263_p2), %v1013_v3  ;;  %v322_v6 = vshrl.u32 (!%p263_p2), %v314_v5, 7  ;;  %v1117_v7 = vand.u32 (!%p263_p2), 127, %v314_v5  ;;  %vm683_vm10 = vcmask (!%p263_p2), 588800   ;;  %vm769_vm11 = vcmask (!%p263_p2), 64512  }
   0x8   : > { %s1009_s15 = smov (!%p263_p2), 127   ;;  %s1010_s16 = smov (!%p263_p2), 112   ;;  %v926_v13 = vld [vmem:[%s1362_s1 + $0x1] ss:$8 sm:$0x3] (!%p263_p2) }
   0x9   : > { %s1012_s17 = smov (!%p263_p2), 113   ;;  %s1014_s18 = smov (!%p263_p2), 111   ;;  %v1119_v10 = vsub.s32 (!%p263_p2), 0, %v322_v6  ;;  %v1121_v11 = vsub.s32 (!%p263_p2), 1, %v322_v6  ;;  %vm381_vm0 = vcmp.lt.s32.totalorder (!%p263_p2), %v1117_v7, 1  ;;  %vm337_vm1 = vcmp.lt.s32.totalorder (!%p263_p2), %v1117_v7, 16 }
   0xa   : > { %v319_v18 = vld [vmem:[%s1362_s1] ss:$8 sm:$0x3] (!%p263_p2)  ;;  %v927_v23 = vld [vmem:[%s1362_s1 + $0x2] ss:$8 sm:$0x3] (!%p263_p2) }
   0xb   : > { %v1131_v16 = vrot.slane (!%p263_p2), %v928_v12, %v1119_v10  ;;  %v1134_v17 = vrot.slane (!%p263_p2), %v928_v12, %v1121_v11  ;;  %v1145_v21 = vrot.slane (!%p263_p2), %v926_v13, %v1119_v10  ;;  %v1148_v22 = vrot.slane (!%p263_p2), %v926_v13, %v1121_v11  ;;  %v929_v42 = vld [vmem:[%s1362_s1 + $0x5] ss:$8 sm:$0x3] (!%p263_p2)  ;;  %v931_v53 = vld [vmem:[%s1362_s1 + $0x7] ss:$8 sm:$0x3] (!%p263_p2) }
   0xc   : > { %vm316_vm2 = vcmp.lt.s32.totalorder (!%p263_p2), %v1117_v7, 17  ;;  %v1155_v24 = vrot.slane (!%p263_p2), %v319_v18, %v1119_v10  ;;  %v1158_v25 = vrot.slane (!%p263_p2), %v319_v18, %v1121_v11  ;;  %vm359_vm3 = vcmp.lt.s32.totalorder (!%p263_p2), %v1117_v7, 15  ;;  %v930_v5 = vld [vmem:[%s1362_s1 + $0x6] ss:$8 sm:$0x3] (!%p263_p2) }
   0xd   : > { %s1371_s28 = smov (!%p296_p3, %s917_s28), 1  ;;  %v1170_v34 = vrot.slane %v927_v23, %v1119_v10  ;;  %v1173_v35 = vrot.slane %v927_v23, %v1121_v11  ;;  %vm403_vm5 = vcmp.lt.s32.totalorder %v1117_v7, 127  ;;  %v1192_v51 = vrot.slane %v929_v42, %v1119_v10  ;;  %v932_v23 = vld [vmem:[%s1362_s1 + $0x10] ss:$8 sm:$0x3] }
   0xe   : > { %s942_s29 = sshll.u32 %s1371_s28, 3  ;;  %v1195_v52 = vrot.slane %v929_v42, %v1121_v11  ;;  %vm447_vm6 = vcmp.lt.s32.totalorder %v1117_v7, 112  ;;  %v1210_v3 = vrot.slane %v931_v53, %v1119_v10  ;;  %vm425_vm7 = vcmp.lt.s32.totalorder %v1117_v7, 113 }
   0xf   : > { %s300_s10 = scalar_lea.vmem %s1361_s0, %s942_s29  ;;  %vm469_vm8 = vcmp.lt.s32.totalorder %v1117_v7, 111  ;;  %s943_s29 = sshll.u32 %s1371_s28, 4 }
  0x10   : > { %v1074_v0 = vld [vmem:[%s300_s10] sm:$0xff]  ;;  %s305_s10 = scalar_lea.vmem %s1369_s8, %s943_s29 }
  0x11   : > { %377 = vrot.lane.b32.xlu1 %v1074_v0, %s1005_s11  ;;  %333 = vrot.lane.b32.xlu0 %v1074_v0, %s1006_s12  ;;  %v1082_v1 = vcombine.high %v1074_v0, %v1074_v0 }
  0x15   : > { %310 = vrot.lane.b32.xlu0 %v1074_v0, %s1007_s13  ;;  %379 = vrot.lane.b32.xlu1 %v1082_v1, %s1005_s11 }
  0x19   : > { %312 = vrot.lane.b32.xlu1 %v1082_v1, %s1007_s13  ;;  %335 = vrot.lane.b32.xlu0 %v1082_v1, %s1006_s12 }
  0x1d   : > { %357 = vrot.lane.b32.xlu1 %v1082_v1, %s1008_s14  ;;  %355 = vrot.lane.b32.xlu0 %v1074_v0, %s1008_s14 }
  0x21   : > { %401 = vrot.lane.b32.xlu1 %v1082_v1, %s1009_s15  ;;  %399 = vrot.lane.b32.xlu0 %v1074_v0, %s1009_s15 }
  0x25   : > { %445 = vrot.lane.b32.xlu1 %v1082_v1, %s1010_s16  ;;  %443 = vrot.lane.b32.xlu0 %v1074_v0, %s1010_s16 }
  0x29   : > { %423 = vrot.lane.b32.xlu1 %v1082_v1, %s1012_s17  ;;  %421 = vrot.lane.b32.xlu0 %v1074_v0, %s1012_s17 }
  0x2d   : > { %467 = vrot.lane.b32.xlu1 %v1082_v1, %s1014_s18  ;;  %465 = vrot.lane.b32.xlu0 %v1074_v0, %s1014_s18 }
  0x31   : > { %524 = vperm.xlu0 %986, %v521_v4   ;;  %v1213_v4 = vrot.slane %v931_v53, %v1121_v11 }
  0x83   : > { %v378_v8 = vpop.permute.xlu1 %377  ;;  %v334_v9 = vpop.permute.xlu0 %333 }
  0x87   : > { %v311_v14 = vpop.permute.xlu0 %310  ;;  %v380_v15 = vpop.permute.xlu1 %379 }
  0x88   : > { %v382_v19 = vsel %vm381_vm0, %v378_v8, %v380_v15  ;;  %v383_v20 = vsel %vm381_vm0, %v380_v15, %v378_v8 }
  0x89   : > { %v397_v28 = vmul.f32 %v1131_v16, %v383_v20  ;;  %v398_v29 = vmul.f32 %v1134_v17, %v382_v19  ;;  %v1228_v19 = vrot.slane %v930_v5, %v1119_v10  ;;  %v1231_v20 = vrot.slane %v930_v5, %v1121_v11 }
  0x8b   : > { %v313_v26 = vpop.permute.xlu1 %312  ;;  %v336_v27 = vpop.permute.xlu0 %335  ;;  %v495_v43 = vrot.slane %v397_v28, 4  ;;  %v496_v44 = vrot.slane %v398_v29, 4 }
  0x8c   : > { %v338_v30 = vsel %vm337_vm1, %v334_v9, %v336_v27  ;;  %v339_v31 = vsel %vm337_vm1, %v336_v27, %v334_v9  ;;  %v317_v36 = vsel %vm316_vm2, %v311_v14, %v313_v26  ;;  %v318_v37 = vsel %vm316_vm2, %v313_v26, %v311_v14 }
  0x8d   : > { %v353_v32 = vmul.f32 %v1145_v21, %v339_v31  ;;  %v354_v33 = vmul.f32 %v1148_v22, %v338_v30  ;;  %v331_v47 = vmul.f32 %v1155_v24, %v318_v37  ;;  %v332_v48 = vmul.f32 %v1158_v25, %v317_v36 }
  0x8f   : > { %v489_v38 = vrot.slane %v353_v32, 4  ;;  %v490_v39 = vrot.slane %v354_v33, 4  ;;  %v358_v40 = vpop.permute.xlu1 %357  ;;  %v356_v41 = vpop.permute.xlu0 %355  ;;  %v1242_v32 = vrot.slane %v932_v23, %v1121_v11 }
  0x90   : > { %v360_v45 = vsel %vm359_vm3, %v356_v41, %v358_v40  ;;  %v361_v46 = vsel %vm359_vm3, %v358_v40, %v356_v41 }
  0x91   : > { %v375_v49 = vmul.f32 %v1170_v34, %v361_v46  ;;  %v376_v50 = vmul.f32 %v1173_v35, %v360_v45  ;;  %v513_v56 = vsel %vm511_vm4, %v332_v48, %v490_v39  ;;  %v512_v58 = vsel %vm511_vm4, %v331_v47, %v489_v38 }
  0x92   : > { %v1247_v39 = vrot.slane %v932_v23, %v1119_v10 }
  0x93   : > { %v402_v54 = vpop.permute.xlu1 %401  ;;  %v400_v55 = vpop.permute.xlu0 %399  ;;  %v515_v57 = vsel %vm511_vm4, %v376_v50, %v496_v44  ;;  %v514_v59 = vsel %vm511_vm4, %v375_v49, %v495_v43 }
  0x94   : > { %v404_v60 = vsel %vm403_vm5, %v400_v55, %v402_v54  ;;  %v405_v61 = vsel %vm403_vm5, %v402_v54, %v400_v55  ;;  %v944_v62 = vpack.c.bf16 %v515_v57, %v513_v56  ;;  %v946_v63 = vpack.c.bf16 %v514_v59, %v512_v58 }
  0x95   : > { %v419_v6 = vmul.f32 %v1192_v51, %v404_v60  ;;  %v420_v8 = vmul.f32 %v1195_v52, %v405_v61 }
  0x96   : > { %945 = vmatprep.subr.bf16.mxu0 %v944_v62 }
  0x97   : > { %v446_v9 = vpop.permute.xlu1 %445  ;;  %947 = vmatpush1.bf16.msra.mxu0 %v946_v63  ;;  %v444_v12 = vpop.permute.xlu0 %443  ;;  %v501_v26 = vrot.slane %v419_v6, 4  ;;  %v502_v27 = vrot.slane %v420_v8, 4 }
  0x98   : > { %v448_v13 = vsel %vm447_vm6, %v444_v12, %v446_v9  ;;  %v449_v14 = vsel %vm447_vm6, %v446_v9, %v444_v12 }
  0x99   : > { %v463_v15 = vmul.f32 %v1210_v3, %v448_v13  ;;  %v464_v18 = vmul.f32 %v1213_v4, %v449_v14  ;;  %v517_v41 = vsel %vm511_vm4, %v1082_v1, %v502_v27  ;;  %v516_v11 = vsel %vm511_vm4, %v1074_v0, %v501_v26  ;;  %v520_v0 = vld [vmem:[%s1363_s2] sm:$0xff] }
  0x9b   : > { %v424_v28 = vpop.permute.xlu1 %423  ;;  %v422_v29 = vpop.permute.xlu0 %421  ;;  %v507_v33 = vrot.slane %v463_v15, 4  ;;  %v508_v36 = vrot.slane %v464_v18, 4 }
  0x9c   : > { %v426_v30 = vsel %vm425_vm7, %v422_v29, %v424_v28  ;;  %v427_v31 = vsel %vm425_vm7, %v424_v28, %v422_v29 }
  0x9d   : > { %v441_v37 = vmul.f32 %v1228_v19, %v426_v30  ;;  %v442_v38 = vmul.f32 %v1231_v20, %v427_v31 }
  0x9f   : > { %v468_v40 = vpop.permute.xlu1 %467  ;;  %v519_v42 = vsel %vm511_vm4, %v442_v38, %v508_v36  ;;  %v466_v43 = vpop.permute.xlu0 %465  ;;  %v518_v44 = vsel %vm511_vm4, %v441_v37, %v507_v33 }
  0xa0   : > { %v948_v45 = vpack.c.bf16 %v519_v42, %v517_v41  ;;  %v470_v46 = vsel %vm469_vm8, %v466_v43, %v468_v40  ;;  %v471_v10 = vsel %vm469_vm8, %v468_v40, %v466_v43  ;;  %v950_v47 = vpack.c.bf16 %v518_v44, %v516_v11 }
  0xa1   : > { %v486_v48 = vmul.f32 %v1242_v32, %v471_v10  ;;  %v485_v1 = vmul.f32 %v1247_v39, %v470_v46 }
  0xa2   : > { %949 = vmatprep.subr.bf16.mxu0 %v948_v45 }
  0xa3   : > { %951 = vmatpush1.bf16.msra.mxu0 %v950_v47 }
  0xa4   : > { %933 = vmatprep.subr.msk.mxu0 %vm511_vm4, %v486_v48 }
  0xa7   : > { %934 = vmatpush1.msk.msra.mxu0 %vm511_vm4, %v485_v1 }
  0xa8   : > { %935 = vmatmul.mubr.msk.f32.vlgmr.msra.gmra.mrb[0].mxu0 %vm527_vm9, %v520_v0 }
  0xa9   : > { %837 = vmatprep.mubr.f32.mxu0 %v1011_v2  ;;  %v677_v2 = vld [vmem:[%s1366_s5] sm:$0xff] }
  0xb0   : > { %v525_v49 = vpop.permute.xlu0 %524 }
 0x17b   : > { %v603_v50 = vpop.f32.mrb[0].mxu0 }
 0x17c   : > { %v604_v53 = vadd.f32 %v603_v50, %v525_v49  ;;  %v605_v54 = vpop.f32.mrb[1].mxu0 }
 0x17d   : > { %v606_v55 = vadd.f32 %v605_v54, %v525_v49 }
 0x17e   : > { %v608_v56 = vmax.f32 %v604_v53, 0.0 }
 0x17f   : > { %v609_v58 = vmax.f32 %v606_v55, 0.0 }
 0x180   : > { %v1267_v57 = vmin.f32 %v608_v56, 6.0 }
 0x181   : > { %v611_v59 = vmin.f32 %v609_v58, 6.0 }
 0x182   : > { %620 = vrot.lane.b32.xlu0 %v1267_v57, %s1006_s12  ;;  %612 = vrot.lane.b32.xlu1 %v1267_v57, %s1007_s13 }
 0x186   : > { %628 = vrot.lane.b32.xlu0 %v1267_v57, %s1008_s14  ;;  %614 = vrot.lane.b32.xlu1 %v611_v59, %s1007_s13 }
 0x18a   : > { %636 = vrot.lane.b32.xlu0 %v1267_v57, %s1005_s11  ;;  %622 = vrot.lane.b32.xlu1 %v611_v59, %s1006_s12 }
 0x18e   : > { %644 = vrot.lane.b32.xlu0 %v1267_v57, %s1009_s15  ;;  %630 = vrot.lane.b32.xlu1 %v611_v59, %s1008_s14 }
 0x192   : > { %652 = vrot.lane.b32.xlu0 %v1267_v57, %s1012_s17  ;;  %638 = vrot.lane.b32.xlu1 %v611_v59, %s1005_s11 }
 0x196   : > { %660 = vrot.lane.b32.xlu0 %v1267_v57, %s1010_s16  ;;  %646 = vrot.lane.b32.xlu1 %v611_v59, %s1009_s15 }
 0x19a   : > { %668 = vrot.lane.b32.xlu0 %v1267_v57, %s1014_s18  ;;  %654 = vrot.lane.b32.xlu1 %v611_v59, %s1012_s17 }
 0x19e   : > { %680 = vperm.xlu0 %986, %v677_v2   ;;  %662 = vrot.lane.b32.xlu1 %v611_v59, %s1010_s16 }
 0x1a2   : > { %670 = vrot.lane.b32.xlu1 %v611_v59, %s1014_s18 }
 0x1f4   : > { %v621_v60 = vpop.permute.xlu0 %620  ;;  %v613_v61 = vpop.permute.xlu1 %612 }
 0x1f8   : > { %v629_v62 = vpop.permute.xlu0 %628  ;;  %v615_v63 = vpop.permute.xlu1 %614 }
 0x1f9   : > { %v616_v5 = vsel %vm316_vm2, %v613_v61, %v615_v63  ;;  %v617_v6 = vsel %vm316_vm2, %v615_v63, %v613_v61  ;;  %v762_v63 = vld [vmem:[%s1367_s6] sm:$0xff] }
 0x1fa   : > { %v618_v14 = vmul.f32 %v617_v6, %v1155_v24  ;;  %v619_v18 = vmul.f32 %v616_v5, %v1158_v25 }
 0x1fc   : > { %v637_v8 = vpop.permute.xlu0 %636  ;;  %v623_v9 = vpop.permute.xlu1 %622 }
 0x1fd   : > { %v624_v12 = vsel %vm337_vm1, %v621_v60, %v623_v9  ;;  %v625_v13 = vsel %vm337_vm1, %v623_v9, %v621_v60 }
 0x1fe   : > { %v626_v15 = vmul.f32 %v625_v13, %v1145_v21  ;;  %v627_v23 = vmul.f32 %v624_v12, %v1148_v22 }
 0x200   : > { %v631_v26 = vpop.permute.xlu1 %630  ;;  %v952_v27 = vpack.c.bf16 %v627_v23, %v619_v18  ;;  %v954_v28 = vpack.c.bf16 %v626_v15, %v618_v14  ;;  %v645_v29 = vpop.permute.xlu0 %644 }
 0x201   : > { %v632_v30 = vsel %vm359_vm3, %v629_v62, %v631_v26  ;;  %v633_v31 = vsel %vm359_vm3, %v631_v26, %v629_v62 }
 0x202   : > { %953 = vmatprep.subr.bf16.mxu1 %v952_v27  ;;  %v634_v22 = vmul.f32 %v633_v31, %v1170_v34  ;;  %v635_v25 = vmul.f32 %v632_v30, %v1173_v35 }
 0x203   : > { %955 = vmatpush1.bf16.msra.mxu1 %v954_v28 }
 0x204   : > { %v639_v33 = vpop.permute.xlu1 %638  ;;  %v653_v38 = vpop.permute.xlu0 %652 }
 0x205   : > { %v640_v21 = vsel %vm381_vm0, %v637_v8, %v639_v33  ;;  %v641_v24 = vsel %vm381_vm0, %v639_v33, %v637_v8 }
 0x206   : > { %v642_v36 = vmul.f32 %v641_v24, %v1131_v16  ;;  %v643_v37 = vmul.f32 %v640_v21, %v1134_v17 }
 0x208   : > { %v647_v40 = vpop.permute.xlu1 %646  ;;  %v956_v41 = vpack.c.bf16 %v643_v37, %v635_v25  ;;  %v958_v42 = vpack.c.bf16 %v642_v36, %v634_v22  ;;  %v661_v45 = vpop.permute.xlu0 %660 }
 0x209   : > { %v648_v43 = vsel %vm403_vm5, %v645_v29, %v647_v40  ;;  %v649_v11 = vsel %vm403_vm5, %v647_v40, %v645_v29 }
 0x20a   : > { %v650_v44 = vmul.f32 %v648_v43, %v1192_v51  ;;  %v651_v34 = vmul.f32 %v649_v11, %v1195_v52  ;;  %957 = vmatprep.subr.bf16.mxu1 %v956_v41 }
 0x20b   : > { %959 = vmatpush1.bf16.msra.mxu1 %v958_v42 }
 0x20c   : > { %v655_v35 = vpop.permute.xlu1 %654  ;;  %v960_v16 = vpack.c.bf16 %v651_v34, %v611_v59  ;;  %v962_v17 = vpack.c.bf16 %v650_v44, %v1267_v57  ;;  %v669_v50 = vpop.permute.xlu0 %668 }
 0x20d   : > { %v656_v46 = vsel %vm425_vm7, %v653_v38, %v655_v35  ;;  %v657_v10 = vsel %vm425_vm7, %v655_v35, %v653_v38 }
 0x20e   : > { %961 = vmatprep.subr.bf16.mxu1 %v960_v16  ;;  %v658_v48 = vmul.f32 %v656_v46, %v1228_v19  ;;  %v659_v1 = vmul.f32 %v657_v10, %v1231_v20 }
 0x20f   : > { %963 = vmatpush1.bf16.msra.mxu1 %v962_v17 }
 0x210   : > { %v663_v47 = vpop.permute.xlu1 %662 }
 0x211   : > { %v664_v51 = vsel %vm447_vm6, %v661_v45, %v663_v47  ;;  %v665_v52 = vsel %vm447_vm6, %v663_v47, %v661_v45 }
 0x212   : > { %v666_v0 = vmul.f32 %v664_v51, %v1210_v3  ;;  %v667_v49 = vmul.f32 %v665_v52, %v1213_v4  ;;  %v676_v3 = vld [vmem:[%s1365_s4] sm:$0xff] }
 0x213   : > { %v763_v4 = vld [vmem:[%s1368_s7] sm:$0xff] }
 0x214   : > { %v671_v53 = vpop.permute.xlu1 %670  ;;  %v964_v54 = vpack.c.bf16 %v667_v49, %v659_v1  ;;  %v966_v55 = vpack.c.bf16 %v666_v0, %v658_v48  ;;  %766 = vperm.xlu1 %987, %v763_v4  }
 0x215   : > { %v673_v56 = vsel %vm469_vm8, %v671_v53, %v669_v50  ;;  %v672_v57 = vsel %vm469_vm8, %v669_v50, %v671_v53 }
 0x216   : > { %v675_v58 = vmul.f32 %v673_v56, %v1242_v32  ;;  %965 = vmatprep.subr.bf16.mxu1 %v964_v54  ;;  %v674_v19 = vmul.f32 %v672_v57, %v1247_v39 }
 0x217   : > { %967 = vmatpush1.bf16.msra.mxu1 %v966_v55 }
 0x218   : > { %703 = vmatprep.subr.mxu1 %v675_v58 }
 0x21b   : > { %704 = vmatpush1.msra.mxu1 %v674_v19 }
 0x21c   : > { %936 = vmatmul.mubr.msk.f32.vlgmr.msra.gmra.mrb[0].mxu1 %vm683_vm10, %v676_v3 }
 0x21d   : > { %v681_v7 = vpop.permute.xlu0 %680 }
 0x293   : > { %v767_v5 = vpop.permute.xlu1 %766 }
 0x2ef   : > { %v753_v20 = vpop.f32.mrb[0].mxu1 }
 0x2f0   : > { %v754_v32 = vadd.f32 %v753_v20, %v681_v7  ;;  %v755_v59 = vpop.f32.mrb[1].mxu1 }
 0x2f1   : > { %v756_v2 = vadd.f32 %v755_v59, %v681_v7 }
 0x2f2   : > { %v758_v60 = vmax.f32 %v754_v32, 0.0 }
 0x2f3   : > { %v759_v61 = vmax.f32 %v756_v2, 0.0 }
 0x2f4   : > { %v760_v62 = vmin.f32 %v758_v60, 6.0 }
 0x2f5   : > { %v761_v39 = vmin.f32 %v759_v61, 6.0 }
 0x2f7   : > { %773 = vmatprep.subr.mxu0 %v761_v39 }
 0x2f8   : > { %774 = vmatpush1.msra.mxu0 %v760_v62 }
 0x2f9   : > { %937 = vmatmul.mubr.msk.f32.vlgmr.msra.gmra.mrb[2].mxu0 %vm769_vm11, %v762_v63 }
 0x3cc   : > { %v839_v6 = vpop.f32.mrb[2].mxu0 }
 0x3cd   : > { %v841_v8 = vpop.f32.mrb[3].mxu0  ;;  %v840_v9 = vadd.f32 %v839_v6, %v767_v5 }
 0x3ce   : > { %v842_v12 = vadd.f32 %v841_v8, %v767_v5 }
 0x3cf   : > { %v844_v13 = vmax.f32 %v840_v9, 0.0 }
 0x3d0   : > { %v845_v14 = vmax.f32 %v842_v12, 0.0 }
 0x3d1   : > { %v846_v15 = vmin.f32 %v844_v13, 6.0 }
 0x3d2   : > { %v847_v18 = vmin.f32 %v845_v14, 6.0 }
 0x3d3   : > { %v938_v23 = vmul.f32 -1.442695, %v846_v15 }
 0x3d4   : > { %v939_v26 = vmul.f32 -1.442695, %v847_v18 }
 0x3d5   : > { %989 = vpow2.f32 %v938_v23 }
 0x3d6   : > { %991 = vpow2.f32 %v939_v26 }
 0x3df   : > { %v990_v27 = vpop.eup %989 }
 0x3e0   : > { %v992_v28 = vpop.eup %991  ;;  %v854_v29 = vadd.f32 1.0, %v990_v27 }
 0x3e1   : > { %v855_v30 = vadd.f32 1.0, %v992_v28 }
 0x3e2   : > { %993 = vrcp.f32 %v854_v29 }
 0x3e3   : > { %995 = vrcp.f32 %v855_v30 }
 0x3ec   : > { %v994_v31 = vpop.eup %993 }
 0x3ed   : > { %v996_v33 = vpop.eup %995  ;;  %860 = vst [vmem:[%s305_s10] sm:$0xff] %v994_v31 }
 0x3ee   : > { %861 = vst [vmem:[%s305_s10 + $0x8] sm:$0xff] %v996_v33 }
 0x3ef PF: > { %s18_s27 = sadd.s32 1, %s1003_s27  }
 0x3f0   : > { %p15_p4 = scmp.ge.s32.totalorder %s18_s27, 4  }
 0x3f2   :  { %17 = sbr.rel (!%p15_p4) target bundleno = 1 (0x1), region = 89 }

</bundles_post_ra>
